<compile_context>
chip_gen: v7x
topology: tpu7x:2x2x1
jax: 0.10.0
libtpu: 0.0.40
codegen_flags: <defaults>
</compile_context>

<pallas_src>
import jax
import jax.numpy as jnp
from jax import lax
from jax.experimental import pallas as pl
from jax.experimental.pallas import tpu as pltpu

BN_EPS = 1e-5
_EXP_GUARD = 80.0  # exp(80) ~ 5.5e34, still finite in f32; guards inf -> NaN in softmax


def _round_up(x, m):
    return ((x + m - 1) // m) * m


def _softplus(x):
    # numerically stable softplus = max(x, 0) + log1p(exp(-|x|))
    return jnp.maximum(x, 0.0) + jnp.log1p(jnp.exp(-jnp.abs(x)))


def prodlda_kernel(x_ref, w1_ref, b1_ref, w2_ref, b2_ref,
                   wmv_ref, bmv_ref, beta_t_ref,
                   out_ref, mv_ref):
    # ---------------- encoder ----------------
    x = x_ref[...].astype(jnp.bfloat16)
    h1 = _softplus(jnp.dot(x, w1_ref[...], preferred_element_type=jnp.float32)
                   + b1_ref[...])
    h2 = _softplus(jnp.dot(h1.astype(jnp.bfloat16), w2_ref[...],
                           preferred_element_type=jnp.float32) + b2_ref[...])

    # fused mu|logvar projection; BatchNorm eval scale already folded into wmv/bmv
    mv = jnp.dot(h2.astype(jnp.bfloat16), wmv_ref[...],
                 preferred_element_type=jnp.float32) + bmv_ref[...]
    T = mv.shape[-1] // 2

    # clamp only the logvar half, store one lane-dense [bm, 2T] slab
    col = lax.broadcasted_iota(jnp.int32, mv.shape, 1)
    mv_out = jnp.where(col >= T, jnp.clip(mv, -10.0, 10.0), mv)
    mv_ref[...] = mv_out

    mu = mv_out[:, :T]
    logvar = mv_out[:, T:]

    # z = mean of LogNormal(mu, exp(0.5*logvar)), with overflow guard on the exponent
    t = jnp.minimum(mu + 0.5 * jnp.exp(logvar), _EXP_GUARD)
    z = jnp.exp(t)

    # F.softmax(z) over topics (approx reciprocal -> EUP slot)
    z = z - jnp.max(z, axis=-1, keepdims=True)
    e = jnp.exp(z)
    z = e * pl.reciprocal(jnp.sum(e, axis=-1, keepdims=True), approx=True)

    # ---------------- decoder ----------------
    logits = jnp.dot(z.astype(jnp.bfloat16), beta_t_ref[...],
                     preferred_element_type=jnp.float32)
    logits = logits - jnp.max(logits, axis=-1, keepdims=True)
    e = jnp.exp(logits)
    out_ref[...] = e / jnp.sum(e, axis=-1, keepdims=True)


def prodlda_forward(x, params, *, block_b=128):
    """x: [B, V] float32 counts. params: output of prepare_params()."""
    B, V = x.shape
    H = params["w1"].shape[1]
    T2 = params["wmv"].shape[1]
    T = T2 // 2

    bm = min(_round_up(block_b, 8), _round_up(B, 8))
    Bp = _round_up(B, bm)
    if Bp != B:
        x = jnp.pad(x, ((0, Bp - B), (0, 0)))
    grid = (Bp // bm,)

    def row_spec(cols):
        return pl.BlockSpec((bm, cols), lambda i: (i, 0))

    def full_spec(r, c):
        # whole-array block, same index every grid step -> DMA'd once, stays resident
        return pl.BlockSpec((r, c), lambda i: (0, 0))

    flops = 2 * Bp * (V * H + H * H + H * T2 + T * V)
    transcendentals = Bp * (4 * H + 3 * T + V)     # softplus exp/log1p, exp(logvar), softmaxes
    bytes_accessed = (x.size * x.dtype.itemsize
                      + sum(int(p.size) * p.dtype.itemsize for p in params.values())
                      + Bp * V * 4 + Bp * T2 * 4)

    out, mv = pl.pallas_call(
        prodlda_kernel,
        grid=grid,
        out_shape=(jax.ShapeDtypeStruct((Bp, V), jnp.float32),
                   jax.ShapeDtypeStruct((Bp, T2), jnp.float32)),
        in_specs=[row_spec(V),
                  full_spec(V, H), full_spec(1, H),
                  full_spec(H, H), full_spec(1, H),
                  full_spec(H, T2), full_spec(1, T2),
                  full_spec(T, V)],
        out_specs=(row_spec(V), row_spec(T2)),
        compiler_params=pltpu.CompilerParams(
            dimension_semantics=("parallel",),
            vmem_limit_bytes=32 * 1024 * 1024),
        cost_estimate=pl.CostEstimate(flops=flops,
                                      transcendentals=transcendentals,
                                      bytes_accessed=bytes_accessed),
    )(x, params["w1"], params["b1"], params["w2"], params["b2"],
      params["wmv"], params["bmv"], params["beta_t"])

    out = out[:B]
    mu = mv[:B, :T]
    logvar = mv[:B, T:]
    return out, mu, logvar


# -------------------- parameters --------------------

def init_raw_params(key, vocab_size, num_topics, hidden_size):
    """PyTorch-layout-equivalent fp32 parameters (weights pre-transposed to [in, out])."""
    ks = jax.random.split(key, 9)
    s = 0.05
    return {
        "w1": s * jax.random.normal(ks[0], (vocab_size, hidden_size), jnp.float32),
        "b1": s * jax.random.normal(ks[1], (1, hidden_size), jnp.float32),
        "w2": s * jax.random.normal(ks[2], (hidden_size, hidden_size), jnp.float32),
        "b2": s * jax.random.normal(ks[3], (1, hidden_size), jnp.float32),
        "wmu": s * jax.random.normal(ks[4], (hidden_size, num_topics), jnp.float32),
        "bmu": s * jax.random.normal(ks[5], (1, num_topics), jnp.float32),
        "wlv": s * jax.random.normal(ks[6], (hidden_size, num_topics), jnp.float32),
        "blv": s * jax.random.normal(ks[7], (1, num_topics), jnp.float32),
        # decoder beta: nn.Linear(num_topics, vocab_size, bias=False) weight is [V, T];
        # stored pre-transposed as [T, V]
        "beta_t": s * jax.random.normal(ks[8], (num_topics, vocab_size), jnp.float32),
    }


def prepare_params(raw):
    """Fold the eval-mode BatchNorm scale into the weights, fuse mu|logvar, cast to bf16."""
    bn = 1.0 / jnp.sqrt(1.0 + BN_EPS)
    wmv = jnp.concatenate([raw["wmu"], raw["wlv"]], axis=1) * bn
    bmv = jnp.concatenate([raw["bmu"], raw["blv"]], axis=1) * bn
    return {
        "w1": raw["w1"].astype(jnp.bfloat16),
        "b1": raw["b1"].astype(jnp.float32),
        "w2": raw["w2"].astype(jnp.bfloat16),
        "b2": raw["b2"].astype(jnp.float32),
        "wmv": wmv.astype(jnp.bfloat16),
        "bmv": bmv.astype(jnp.float32),
        "beta_t": (raw["beta_t"] * bn).astype(jnp.bfloat16),
    }


# -------------------- references --------------------

def prodlda_reference_prepared(x, p):
    """Plain-JAX reference mirroring the kernel's bf16/f32 numerics (folded params)."""
    h1 = jax.nn.softplus(jnp.dot(x.astype(jnp.bfloat16), p["w1"],
                                 preferred_element_type=jnp.float32) + p["b1"])
    h2 = jax.nn.softplus(jnp.dot(h1.astype(jnp.bfloat16), p["w2"],
                                 preferred_element_type=jnp.float32) + p["b2"])
    mv = jnp.dot(h2.astype(jnp.bfloat16), p["wmv"],
                 preferred_element_type=jnp.float32) + p["bmv"]
    T = mv.shape[-1] // 2
    mu = mv[:, :T]
    logvar = jnp.clip(mv[:, T:], -10.0, 10.0)
    t = jnp.minimum(mu + 0.5 * jnp.exp(logvar), _EXP_GUARD)
    z = jax.nn.softmax(jnp.exp(t), axis=-1)
    logits = jnp.dot(z.astype(jnp.bfloat16), p["beta_t"],
                     preferred_element_type=jnp.float32)
    return jax.nn.softmax(logits, axis=-1), mu, logvar


def prodlda_reference_fp32(x, raw):
    """Original-module semantics in full fp32 (unfused, unfolded) — loose sanity check."""
    bn = 1.0 / jnp.sqrt(1.0 + BN_EPS)
    h1 = jax.nn.softplus(x @ raw["w1"] + raw["b1"])
    h2 = jax.nn.softplus(h1 @ raw["w2"] + raw["b2"])
    mu = (h2 @ raw["wmu"] + raw["bmu"]) * bn
    logvar = jnp.clip((h2 @ raw["wlv"] + raw["blv"]) * bn, -10.0, 10.0)
    z = jax.nn.softmax(jnp.exp(mu + 0.5 * jnp.exp(logvar)), axis=-1)
    out = jax.nn.softmax((z @ raw["beta_t"]) * bn, axis=-1)
    return out, mu, logvar


if __name__ == "__main__":
    VOCAB, TOPICS, HIDDEN, BATCH = 256, 32, 128, 64

    key = jax.random.PRNGKey(0)
    k_params, k_x = jax.random.split(key)
    raw = init_raw_params(k_params, VOCAB, TOPICS, HIDDEN)
    params = prepare_params(raw)

    # bag-of-words style non-negative counts
    x = jnp.floor(5.0 * jax.random.uniform(k_x, (BATCH, VOCAB), jnp.float32))

    # block_b=32 -> grid=(2,) batch tiles, exercising the pipelined/parallel grid
    out, mu, logvar = prodlda_forward(x, params, block_b=32)
    jax.block_until_ready((out, mu, logvar))

    # tight check vs. a reference with identical bf16/f32 numerics
    r_out, r_mu, r_lv = prodlda_reference_prepared(x, params)
    assert jnp.allclose(out, r_out, atol=1e-4, rtol=1e-4), "output mismatch (prepared ref)"
    assert jnp.allclose(mu, r_mu, atol=1e-4, rtol=1e-4), "mu mismatch (prepared ref)"
    assert jnp.allclose(logvar, r_lv, atol=1e-4, rtol=1e-4), "logvar mismatch (prepared ref)"

    # loose check vs. the original fp32 module semantics (bf16 weights introduce ~1e-3 noise)
    f_out, f_mu, f_lv = prodlda_reference_fp32(x, raw)
    assert jnp.allclose(out, f_out, atol=3e-2, rtol=0.0), "output mismatch (fp32 ref)"
    assert jnp.allclose(mu, f_mu, atol=3e-2, rtol=0.0), "mu mismatch (fp32 ref)"
    assert jnp.allclose(logvar, f_lv, atol=3e-2, rtol=0.0), "logvar mismatch (fp32 ref)"

    # rows of the reconstructed matrix must sum to 1 (softmax over vocab)
    assert jnp.allclose(jnp.sum(out, axis=1), 1.0, atol=1e-4)
    assert bool(jnp.all(jnp.isfinite(out))) and bool(jnp.all(jnp.isfinite(mu)))

    print("KERNEL_OK")
</pallas_src>

<mosaic_0001>
module attributes {stable_mosaic.version = 11 : i64} {
  func.func @prodlda_kernel(%arg0: i32, %arg1: memref<32x256xf32, #tpu.memory_space<vmem>>, %arg2: memref<256x128xbf16, #tpu.memory_space<vmem>>, %arg3: memref<1x128xf32, #tpu.memory_space<vmem>>, %arg4: memref<128x128xbf16, #tpu.memory_space<vmem>>, %arg5: memref<1x128xf32, #tpu.memory_space<vmem>>, %arg6: memref<128x64xbf16, #tpu.memory_space<vmem>>, %arg7: memref<1x64xf32, #tpu.memory_space<vmem>>, %arg8: memref<32x256xbf16, #tpu.memory_space<vmem>>, %arg9: memref<32x256xf32, #tpu.memory_space<vmem>>, %arg10: memref<32x64xf32, #tpu.memory_space<vmem>>) attributes {dimension_semantics = [#tpu.dimension_semantics<parallel>], iteration_bounds = array<i64: 2>, scalar_prefetch = 0 : i64, scratch_operands = 0 : i64, tpu.core_type = #tpu.core_type<tc>, window_params = [{transform_indices = @transform_0, window_bounds = array<i64: 32, 256>}, {pipeline_mode = #tpu.pipeline_mode<synchronous>, transform_indices = @transform_1, window_bounds = array<i64: 256, 128>}, {pipeline_mode = #tpu.pipeline_mode<synchronous>, transform_indices = @transform_2, window_bounds = array<i64: 1, 128>}, {pipeline_mode = #tpu.pipeline_mode<synchronous>, transform_indices = @transform_3, window_bounds = array<i64: 128, 128>}, {pipeline_mode = #tpu.pipeline_mode<synchronous>, transform_indices = @transform_4, window_bounds = array<i64: 1, 128>}, {pipeline_mode = #tpu.pipeline_mode<synchronous>, transform_indices = @transform_5, window_bounds = array<i64: 128, 64>}, {pipeline_mode = #tpu.pipeline_mode<synchronous>, transform_indices = @transform_6, window_bounds = array<i64: 1, 64>}, {pipeline_mode = #tpu.pipeline_mode<synchronous>, transform_indices = @transform_7, window_bounds = array<i64: 32, 256>}, {transform_indices = @transform_8, window_bounds = array<i64: 32, 256>}, {transform_indices = @transform_9, window_bounds = array<i64: 32, 64>}]} {
    %c0 = arith.constant 0 : index
    %c0_0 = arith.constant 0 : index
    %0 = vector.load %arg1[%c0, %c0_0] : memref<32x256xf32, #tpu.memory_space<vmem>>, vector<32x256xf32>
    %1 = arith.truncf %0 : vector<32x256xf32> to vector<32x256xbf16>
    %c0_1 = arith.constant 0 : index
    %c0_2 = arith.constant 0 : index
    %2 = vector.load %arg2[%c0_1, %c0_2] : memref<256x128xbf16, #tpu.memory_space<vmem>>, vector<256x128xbf16>
    %cst = arith.constant dense<0.000000e+00> : vector<32x128xf32>
    %3 = tpu.matmul %1, %2, %cst {dimension_numbers = #tpu.dot_dimension_numbers<[1], [0], [0], [1], [0, 0, 1, 1], [], []>} : vector<32x256xbf16>, vector<256x128xbf16>, vector<32x128xf32> -> vector<32x128xf32>
    %c0_3 = arith.constant 0 : index
    %c0_4 = arith.constant 0 : index
    %4 = vector.load %arg3[%c0_3, %c0_4] : memref<1x128xf32, #tpu.memory_space<vmem>>, vector<1x128xf32>
    %5 = vector.broadcast %4 : vector<1x128xf32> to vector<32x128xf32>
    %6 = arith.addf %3, %5 : vector<32x128xf32>
    %cst_5 = arith.constant 0.000000e+00 : f32
    %7 = vector.broadcast %cst_5 : f32 to vector<32x128xf32>
    %8 = arith.maximumf %6, %7 : vector<32x128xf32>
    %9 = math.absf %6 : vector<32x128xf32>
    %cst_6 = arith.constant 0.000000e+00 : f32
    %10 = vector.broadcast %cst_6 : f32 to vector<32x128xf32>
    %11 = arith.subf %10, %9 : vector<32x128xf32>
    %12 = math.exp %11 : vector<32x128xf32>
    %13 = math.log1p %12 : vector<32x128xf32>
    %14 = arith.addf %8, %13 : vector<32x128xf32>
    %15 = arith.truncf %14 : vector<32x128xf32> to vector<32x128xbf16>
    %c0_7 = arith.constant 0 : index
    %c0_8 = arith.constant 0 : index
    %16 = vector.load %arg4[%c0_7, %c0_8] : memref<128x128xbf16, #tpu.memory_space<vmem>>, vector<128x128xbf16>
    %cst_9 = arith.constant dense<0.000000e+00> : vector<32x128xf32>
    %17 = tpu.matmul %15, %16, %cst_9 {dimension_numbers = #tpu.dot_dimension_numbers<[1], [0], [0], [1], [0, 0, 1, 1], [], []>} : vector<32x128xbf16>, vector<128x128xbf16>, vector<32x128xf32> -> vector<32x128xf32>
    %c0_10 = arith.constant 0 : index
    %c0_11 = arith.constant 0 : index
    %18 = vector.load %arg5[%c0_10, %c0_11] : memref<1x128xf32, #tpu.memory_space<vmem>>, vector<1x128xf32>
    %19 = vector.broadcast %18 : vector<1x128xf32> to vector<32x128xf32>
    %20 = arith.addf %17, %19 : vector<32x128xf32>
    %cst_12 = arith.constant 0.000000e+00 : f32
    %21 = vector.broadcast %cst_12 : f32 to vector<32x128xf32>
    %22 = arith.maximumf %20, %21 : vector<32x128xf32>
    %23 = math.absf %20 : vector<32x128xf32>
    %cst_13 = arith.constant 0.000000e+00 : f32
    %24 = vector.broadcast %cst_13 : f32 to vector<32x128xf32>
    %25 = arith.subf %24, %23 : vector<32x128xf32>
    %26 = math.exp %25 : vector<32x128xf32>
    %27 = math.log1p %26 : vector<32x128xf32>
    %28 = arith.addf %22, %27 : vector<32x128xf32>
    %29 = arith.truncf %28 : vector<32x128xf32> to vector<32x128xbf16>
    %c0_14 = arith.constant 0 : index
    %c0_15 = arith.constant 0 : index
    %30 = vector.load %arg6[%c0_14, %c0_15] : memref<128x64xbf16, #tpu.memory_space<vmem>>, vector<128x64xbf16>
    %cst_16 = arith.constant dense<0.000000e+00> : vector<32x64xf32>
    %31 = tpu.matmul %29, %30, %cst_16 {dimension_numbers = #tpu.dot_dimension_numbers<[1], [0], [0], [1], [0, 0, 1, 1], [], []>} : vector<32x128xbf16>, vector<128x64xbf16>, vector<32x64xf32> -> vector<32x64xf32>
    %c0_17 = arith.constant 0 : index
    %c0_18 = arith.constant 0 : index
    %32 = vector.load %arg7[%c0_17, %c0_18] : memref<1x64xf32, #tpu.memory_space<vmem>>, vector<1x64xf32>
    %33 = vector.broadcast %32 : vector<1x64xf32> to vector<32x64xf32>
    %34 = arith.addf %31, %33 : vector<32x64xf32>
    %35 = tpu.iota {dimensions = array<i32: 1>} : vector<32x64xi32>
    %c32_i32 = arith.constant 32 : i32
    %36 = vector.broadcast %c32_i32 : i32 to vector<32x64xi32>
    %37 = arith.cmpi sge, %35, %36 : vector<32x64xi32>
    %cst_19 = arith.constant -1.000000e+01 : f32
    %cst_20 = arith.constant 1.000000e+01 : f32
    %38 = vector.broadcast %cst_19 : f32 to vector<32x64xf32>
    %39 = arith.maximumf %38, %34 : vector<32x64xf32>
    %40 = vector.broadcast %cst_20 : f32 to vector<32x64xf32>
    %41 = arith.minimumf %40, %39 : vector<32x64xf32>
    %42 = arith.select %37, %41, %34 : vector<32x64xi1>, vector<32x64xf32>
    %c0_21 = arith.constant 0 : index
    %c0_22 = arith.constant 0 : index
    %43 = vector.load %arg10[%c0_21, %c0_22] : memref<32x64xf32, #tpu.memory_space<vmem>>, vector<32x64xf32>
    tpu.vector_store %arg10[%c0_21, %c0_22], %42 {strides = array<i32>} : memref<32x64xf32, #tpu.memory_space<vmem>>, vector<32x64xf32>,
    %44 = vector.extract_strided_slice %42 {offsets = [0, 0], sizes = [32, 32], strides = [1, 1]} : vector<32x64xf32> to vector<32x32xf32>
    %45 = vector.extract_strided_slice %42 {offsets = [0, 32], sizes = [32, 32], strides = [1, 1]} : vector<32x64xf32> to vector<32x32xf32>
    %46 = math.exp %45 : vector<32x32xf32>
    %cst_23 = arith.constant 5.000000e-01 : f32
    %47 = vector.broadcast %cst_23 : f32 to vector<32x32xf32>
    %48 = arith.mulf %47, %46 : vector<32x32xf32>
    %49 = arith.addf %44, %48 : vector<32x32xf32>
    %cst_24 = arith.constant 8.000000e+01 : f32
    %50 = vector.broadcast %cst_24 : f32 to vector<32x32xf32>
    %51 = arith.minimumf %49, %50 : vector<32x32xf32>
    %52 = math.exp %51 : vector<32x32xf32>
    %cst_25 = arith.constant dense<0xFF800000> : vector<32xf32>
    %53 = vector.multi_reduction <maximumf>, %52, %cst_25 [1] : vector<32x32xf32> to vector<32xf32>
    %54 = vector.shape_cast %53 : vector<32xf32> to vector<32x1xf32>
    %55 = vector.broadcast %54 : vector<32x1xf32> to vector<32x32xf32>
    %56 = arith.subf %52, %55 : vector<32x32xf32>
    %57 = math.exp %56 : vector<32x32xf32>
    %cst_26 = arith.constant dense<0.000000e+00> : vector<32xf32>
    %58 = vector.multi_reduction <add>, %57, %cst_26 [1] : vector<32x32xf32> to vector<32xf32>
    %59 = vector.shape_cast %58 : vector<32xf32> to vector<32x1xf32>
    %60 = tpu.reciprocal %59 {approx = true} : vector<32x1xf32> -> vector<32x1xf32>
    %61 = vector.broadcast %60 : vector<32x1xf32> to vector<32x32xf32>
    %62 = arith.mulf %57, %61 : vector<32x32xf32>
    %63 = arith.truncf %62 : vector<32x32xf32> to vector<32x32xbf16>
    %c0_27 = arith.constant 0 : index
    %c0_28 = arith.constant 0 : index
    %64 = vector.load %arg8[%c0_27, %c0_28] : memref<32x256xbf16, #tpu.memory_space<vmem>>, vector<32x256xbf16>
    %cst_29 = arith.constant dense<0.000000e+00> : vector<32x256xf32>
    %65 = tpu.matmul %63, %64, %cst_29 {dimension_numbers = #tpu.dot_dimension_numbers<[1], [0], [0], [1], [0, 0, 1, 1], [], []>} : vector<32x32xbf16>, vector<32x256xbf16>, vector<32x256xf32> -> vector<32x256xf32>
    %cst_30 = arith.constant dense<0xFF800000> : vector<32xf32>
    %66 = vector.multi_reduction <maximumf>, %65, %cst_30 [1] : vector<32x256xf32> to vector<32xf32>
    %67 = vector.shape_cast %66 : vector<32xf32> to vector<32x1xf32>
    %68 = vector.broadcast %67 : vector<32x1xf32> to vector<32x256xf32>
    %69 = arith.subf %65, %68 : vector<32x256xf32>
    %70 = math.exp %69 : vector<32x256xf32>
    %cst_31 = arith.constant dense<0.000000e+00> : vector<32xf32>
    %71 = vector.multi_reduction <add>, %70, %cst_31 [1] : vector<32x256xf32> to vector<32xf32>
    %72 = vector.shape_cast %71 : vector<32xf32> to vector<32x1xf32>
    %73 = vector.broadcast %72 : vector<32x1xf32> to vector<32x256xf32>
    %74 = arith.divf %70, %73 : vector<32x256xf32>
    %c0_32 = arith.constant 0 : index
    %c0_33 = arith.constant 0 : index
    %75 = vector.load %arg9[%c0_32, %c0_33] : memref<32x256xf32, #tpu.memory_space<vmem>>, vector<32x256xf32>
    tpu.vector_store %arg9[%c0_32, %c0_33], %74 {strides = array<i32>} : memref<32x256xf32, #tpu.memory_space<vmem>>, vector<32x256xf32>,
    return
  }
  func.func @transform_0(%arg0: i32) -> (i32, i32) {
    %c0_i32 = arith.constant 0 : i32
    %c0_i32_0 = arith.constant 0 : i32
    return %arg0, %c0_i32 : i32, i32
  }
  func.func @transform_1(%arg0: i32) -> (i32, i32) {
    %c0_i32 = arith.constant 0 : i32
    %c0_i32_0 = arith.constant 0 : i32
    %c0_i32_1 = arith.constant 0 : i32
    return %c0_i32, %c0_i32_0 : i32, i32
  }
  func.func @transform_2(%arg0: i32) -> (i32, i32) {
    %c0_i32 = arith.constant 0 : i32
    %c0_i32_0 = arith.constant 0 : i32
    %c0_i32_1 = arith.constant 0 : i32
    return %c0_i32, %c0_i32_0 : i32, i32
  }
  func.func @transform_3(%arg0: i32) -> (i32, i32) {
    %c0_i32 = arith.constant 0 : i32
    %c0_i32_0 = arith.constant 0 : i32
    %c0_i32_1 = arith.constant 0 : i32
    return %c0_i32, %c0_i32_0 : i32, i32
  }
  func.func @transform_4(%arg0: i32) -> (i32, i32) {
    %c0_i32 = arith.constant 0 : i32
    %c0_i32_0 = arith.constant 0 : i32
    %c0_i32_1 = arith.constant 0 : i32
    return %c0_i32, %c0_i32_0 : i32, i32
  }
  func.func @transform_5(%arg0: i32) -> (i32, i32) {
    %c0_i32 = arith.constant 0 : i32
    %c0_i32_0 = arith.constant 0 : i32
    %c0_i32_1 = arith.constant 0 : i32
    return %c0_i32, %c0_i32_0 : i32, i32
  }
  func.func @transform_6(%arg0: i32) -> (i32, i32) {
    %c0_i32 = arith.constant 0 : i32
    %c0_i32_0 = arith.constant 0 : i32
    %c0_i32_1 = arith.constant 0 : i32
    return %c0_i32, %c0_i32_0 : i32, i32
  }
  func.func @transform_7(%arg0: i32) -> (i32, i32) {
    %c0_i32 = arith.constant 0 : i32
    %c0_i32_0 = arith.constant 0 : i32
    %c0_i32_1 = arith.constant 0 : i32
    return %c0_i32, %c0_i32_0 : i32, i32
  }
  func.func @transform_8(%arg0: i32) -> (i32, i32) {
    %c0_i32 = arith.constant 0 : i32
    %c0_i32_0 = arith.constant 0 : i32
    return %arg0, %c0_i32 : i32, i32
  }
  func.func @transform_9(%arg0: i32) -> (i32, i32) {
    %c0_i32 = arith.constant 0 : i32
    %c0_i32_0 = arith.constant 0 : i32
    return %arg0, %c0_i32 : i32, i32
  }
}

</mosaic_0001>

<bundles_post_ra>
// kernel: tpu_custom_call.1
= control target key start
LH: loop header
LB: loop body
LE: loop exit
PB: predicated region body
PF: predicated region fallthrough
CT: control target
= control target key end

     0   :  { %15 = vsyncpa [#allocation3], 0  ;;  %s2323_s0 = inlined_call_operand.hbm [shape: f32[64,256], index: 0, kind: input, shape index: {}]   ;;  %s2324_s1 = inlined_call_operand.hbm [shape: bf16[256,128], index: 1, kind: input, shape index: {}]   ;;  %s2325_s2 = inlined_call_operand.vmem [shape: f32[1,128], index: 2, kind: input, shape index: {}]   ;;  %s2326_s3 = inlined_call_operand.vmem [shape: bf16[128,128], index: 3, kind: input, shape index: {}]   ;;  %s2327_s4 = inlined_call_operand.vmem [shape: f32[1,128], index: 4, kind: input, shape index: {}]   ;;  %s2328_s5 = inlined_call_operand.vmem [shape: bf16[128,64], index: 5, kind: input, shape index: {}]   ;;  %s2329_s6 = inlined_call_operand.vmem [shape: f32[1,64], index: 6, kind: input, shape index: {}]   ;;  %s2330_s7 = inlined_call_operand.vmem [shape: bf16[32,256], index: 7, kind: input, shape index: {}]   ;;  %s2331_s8 = inlined_call_operand.hbm [shape: f32[64,256], index: 8, kind: output, shape index: {0}]   ;;  %s2332_s9 = inlined_call_operand.hbm [shape: f32[64,64], index: 9, kind: output, shape index: {1}]  }
   0x1   :  { %17 = vsyncpa [#allocation3 + $0x1], 0 }
   0x2   :  { %18 = vsyncpa [#allocation6], 0 }
   0x3   :  { %19 = vsyncpa [#allocation4], 0 }
   0x4   :  { %21 = vsyncpa [#allocation4 + $0x1], 0 }
   0x5   :  { %22 = vsyncpa [#allocation9], 0 }
   0x6   :  { %24 = vsyncpa [#allocation9 + $0x1], 0  ;;  %s1939_s30 = smov 0   ;;  %s1941_s10 = smov 0  }
   0x7   :  { %s1943_s11 = smov 0   ;;  %s1945_s12 = smov 0  }
   0x8 LB: > { %s1960_s13 = sadd.s32 4294967295, %s1873_s12   ;;  %s1355_s14 = sadd.s32 4294967294, %s1873_s12   ;;  %s1873_s12 = sphi %s1945_s12, %s2357_s12   ;;  %s1869_s11 = sphi %s1943_s11, %s2360_s11   ;;  %s1865_s10 = sphi %s1941_s10, %s2359_s10   ;;  %s1861_s30 = sphi %s1939_s30, %s2358_s30  }
   0x9   : > { %p50_p0 = scmp.ne.s32.totalorder %s1865_s10, %s1861_s30  ;;  %p2333_p1 = scmp.eq.s32.totalorder %s1960_s13, 0 }
   0xa   : > { %p227_p3 = scmp.eq.s32.totalorder %s1355_s14, 1  ;;  %p1356_p5 = scmp.ge.s32.totalorder %s1873_s12, 1 }
   0xb   : > { %p1969_p4 = por %p2333_p1, %p50_p0  ;;  %p260_p7 = scmp.lt.s32.totalorder %s1873_s12, 3 }
   0xc   : > { %p1974_p6 = por %p227_p3, %p50_p0  ;;  %s1875_s18 = smov [#allocation5]  }
   0xd   : > { %s2339_s15 = scalar_select %p1969_p4, 1, 0 }
   0xe   : > { %s2340_s16 = scalar_select %p1974_p6, 1, 0 }
   0xf   : > { %p1979_p8 = pnand %p1356_p5, %p260_p7  ;;  %s272_s19 = sshll.u32 %s1875_s18, 4  ;;  %s1983_s19 = int_to_ptr.vmem [resolvable:$true] %s272_s19 }
  0x10   : > { %2341 = sst [smem:[#allocation14_spill]] %s2340_s16  ;;  %s1995_s21 = sadd.s32 1, %s1873_s12  }
  0x11   : > { %s2342_s17 = scalar_select %p1979_p8, 1, 0 }
  0x12   : > { %p1525_p9 = pneg %p1979_p8  ;;  %2344 = sst [smem:[#allocation15_spill]] %s1995_s21 }
  0x13   : > { %s37_s22 = sadd.s32 1, %s1869_s11  ;;  %s34_s23 = ssub.s32 %s1873_s12, %s1995_s21 }
  0x14   : > { %p1990_p11 = pnand %p1525_p9, %p2333_p1  ;;  %s1713_s26 = scalar_lea.hbm %s2324_s1, 2048 }
  0x15   : > { %p1714_p12 = scmp.ne.s32.totalorder %s2324_s1, %s1713_s26  ;;  %p1720_p5 = scmp.lt.u32.totalorder %s1713_s26, %s2324_s1 }
  0x16   : > { %p1715_p13 = pneg %p1990_p11 }
  0x18   : > { %p1716_p0 = pnand %p1715_p13, %p1714_p12 }
  0x1a   : > { %p1717_p3 = pneg %p1716_p0 }
  0x1c   : > { %p1722_p7 = pnand %p1720_p5, %p1717_p3 }
  0x1e   : > { %1725 = shalt.err (!%p1722_p7)
}
  0x1f   : > { %s1726_s18 = scalar_lea.vmem %s1983_s19, 2048  ;;  %p1734_p2 = scmp.lt.s32.totalorder %s1983_s19, %s1983_s19 }
  0x20   : > { %p1727_p9 = scmp.ne.s32.totalorder %s1983_s19, %s1726_s18  ;;  %p1735_p6 = scmp.lt.s32.totalorder %s1726_s18, %s1726_s18 }
  0x22   : > { %p1729_p10 = pnand %p1727_p9, %p1715_p13  ;;  %p1736_p4 = por %p1735_p6, %p1734_p2 }
  0x24   : > { %p1730_p1 = pneg %p1729_p10 }
  0x26   : > { %p1737_p8 = pnand %p1736_p4, %p1730_p1 }
  0x28   : > { %1740 = shalt.err (!%p1737_p8)
}
  0x29   : > { %s1876_s24 = smov 64   ;;  %s1877_s25 = smov 4  }
  0x2a   : > { %1528 = dma.hbm_to_vmem [thread:$0]  (!%p1990_p11), %s2324_s1, 2048, %s1983_s19, [#allocation6], %s1876_s24, %s1876_s24, %s1877_s25  }
  0x2b   : > { %p35_p2 = scmp.eq.s32.totalorder %s34_s23, 0  ;;  %p44_p1 = scmp.ne.s32.totalorder %s1869_s11, %s1865_s10 }
  0x2c   : > { %p45_p4 = scmp.eq.s32.totalorder %s1873_s12, 0  ;;  %p1541_p6 = scmp.lt.s32.totalorder %s1873_s12, 2 }
  0x2d   : > { %s2026_s28 = scalar_select %p35_p2, %s1869_s11, %s37_s22  }
  0x2e   : > { %p46_p8 = por %p45_p4, %p44_p1  ;;  %p2345_p10 = scmp.eq.s32.totalorder %s1960_s13, 1 }
  0x2f   : > { %s304_s14 = sand.u32 1, %s1869_s11   ;;  %s1423_s18 = sshll.u32 %s1873_s12, 10 }
  0x30   : > { %p2030_p12 = por %p2345_p10, %p44_p1  ;;  %s1359_s21 = sshll.u32 %s304_s14, 6 }
  0x31   : > { %s2039_s26 = scalar_lea.hbm %s2323_s0, %s1423_s18  ;;  %s308_s19 = scalar_lea.vmem [#allocation2], %s1359_s21 }
  0x32   : > { %s316_s22 = sshll.u32 %s308_s19, 4  ;;  %p2041_p11 = pnand %p1541_p6, %p46_p8  ;;  %s2045_s22 = int_to_ptr.vmem [resolvable:$true] %s316_s22 }
  0x33   : > { %s2047_s24 = scalar_lea.sflag [#allocation3], %s304_s14  ;;  %s1741_s25 = scalar_lea.hbm %s2039_s26, 1024 }
  0x34   : > { %p1742_p13 = scmp.ne.s32.totalorder %s2039_s26, %s1741_s25  ;;  %p1743_p0 = pneg %p2041_p11 }
  0x35   : > { %s1746_s27 = scalar_lea.hbm %s2323_s0, 2048  ;;  %p1747_p7 = scmp.lt.u32.totalorder %s2039_s26, %s2323_s0 }
  0x36   : > { %p1744_p3 = pnand %p1743_p0, %p1742_p13  ;;  %p1748_p9 = scmp.lt.u32.totalorder %s1746_s27, %s1741_s25 }
  0x37   : > { %p1750_p1 = scmp.lt.u32.totalorder %s1741_s25, %s2039_s26 }
  0x38   : > { %p1745_p5 = pneg %p1744_p3  ;;  %p1749_p2 = por %p1748_p9, %p1747_p7 }
  0x3a   : > { %p1751_p4 = por %p1750_p1, %p1749_p2 }
  0x3c   : > { %p1752_p6 = pnand %p1751_p4, %p1745_p5 }
  0x3e   : > { %1755 = shalt.err (!%p1752_p6)
}
  0x3f   : > { %s1756_s14 = scalar_lea.vmem %s2045_s22, 1024  ;;  %s1878_s19 = smov [#allocation2]  }
  0x40   : > { %p1757_p8 = scmp.ne.s32.totalorder %s2045_s22, %s1756_s14  ;;  %s1761_s16 = sshll.u32 %s1878_s19, 4  ;;  %s1762_s16 = int_to_ptr.vmem [resolvable:$false] %s1761_s16 }
  0x41   : > { %s1763_s21 = scalar_lea.vmem %s1762_s16, 2048  ;;  %p1764_p3 = scmp.lt.s32.totalorder %s2045_s22, %s1762_s16 }
  0x42   : > { %p1759_p10 = pnand %p1757_p8, %p1743_p0  ;;  %p1765_p7 = scmp.lt.s32.totalorder %s1763_s21, %s1756_s14 }
  0x44   : > { %p1760_p13 = pneg %p1759_p10  ;;  %p1766_p9 = por %p1765_p7, %p1764_p3 }
  0x46   : > { %p1767_p2 = pnand %p1766_p9, %p1760_p13 }
  0x48   : > { %1770 = shalt.err (!%p1767_p2)
}
  0x49   : > { %s1879_s25 = smov 256   ;;  %s1880_s27 = smov 16  }
  0x4a   : > { %1532 = dma.hbm_to_vmem [thread:$0]  (!%p2041_p11), %s2039_s26, 1024, %s2045_s22, %s2047_s24, %s1879_s25, %s1879_s25, %s1880_s27  }
  0x4b   : > { %p2348_p0 = scmp.ne.s32.totalorder %s2342_s17, 0 }
  0x4c   : > { %s2078_s18 = sand.u32 (!%p2348_p0), 1, %s1865_s10   ;;  %p2349_p5 = scmp.ne.s32.totalorder (!%p2348_p0), %s2339_s15, 0 }
  0x4d   : > { %328 = sbr.rel (%p2348_p0) target bundleno = 1880 (0x758), region = 52  ;;  %s1364_s20 = sshll.u32 (!%p2348_p0), %s2078_s18, 6 }
  0x4e   : > { %s331_s14 = scalar_lea.sflag (!%p2348_p0), [#allocation3], %s2078_s18  ;;  %s2084_s19 = scalar_lea.vmem (!%p2348_p0), [#allocation2], %s1364_s20 }
  0x54   : > { %1844 = dma.done.wait (%p2349_p5), %s331_s14, 1024  }
  0x55   : > { %1846 = vsyncadd (%p2349_p5), %s331_s14, 4294966272  ;;  %p2350_p11 = scmp.eq.s32.totalorder %s1960_s13, 0 }
  0x57   : > { %1848 = dma.done.wait (%p2350_p11), [#allocation6], 2048   ;;  %p2351_p1 = pmov %p2350_p11 }
  0x58   : > { %v1587_v0 = vld [vmem:[#allocation5 + $0x40] sm:$0xff]   ;;  %v1589_v2 = vld [vmem:[#allocation5 + $0x48] sm:$0xff]   ;;  %v1591_v4 = vld [vmem:[#allocation5 + $0x50] sm:$0xff]   ;;  %s1367_s26 = sshll.u32 %s2078_s18, 5  ;;  %vm957_vm9 = vcmask 523264   ;;  %s1881_s23 = smov 96  }
  0x59   : > { %1850 = vsyncadd (%p2351_p1), [#allocation6], 4294965248  ;;  %v1588_v1 = vld [vmem:[#allocation5] sm:$0xff]   ;;  %1427 = vmatprep.subr.bf16.mxu0 %v1587_v0  ;;  %v1590_v3 = vld [vmem:[#allocation5 + $0x8] sm:$0xff]   ;;  %s2187_s22 = scalar_lea.vmem [#allocation8], %s1367_s26  ;;  %vm1006_vm10 = vcmask 261120  }
  0x5a   : > { %1428 = vmatpush3.bf16.msra.mxu0 %v1588_v1  ;;  %v1592_v5 = vld [vmem:[#allocation5 + $0x10] sm:$0xff]   ;;  %v1593_v6 = vld [vmem:[#allocation5 + $0x58] sm:$0xff]   ;;  %v1595_v8 = vld [vmem:[#allocation5 + $0x60] sm:$0xff]   ;;  %s1240_s17 = sshll.u32 %s2187_s22, 4  ;;  %s1426_s26 = sshll.u32 %s1960_s13, 9  ;;  %s2235_s17 = int_to_ptr.vmem [resolvable:$true] %s1240_s17 }
  0x5b   : > { %1429 = vmatprep.subr.bf16.mxu0 %v1589_v2  ;;  %v1594_v7 = vld [vmem:[#allocation5 + $0x18] sm:$0xff]   ;;  %v1596_v9 = vld [vmem:[#allocation5 + $0x20] sm:$0xff]   ;;  %v1597_v10 = vld [vmem:[#allocation5 + $0x68] sm:$0xff]   ;;  %s2241_s16 = scalar_lea.hbm %s2332_s9, %s1426_s26  ;;  %s1210_s21 = scalar_lea.sflag [#allocation9], %s2078_s18 }
  0x5c   : > { %v383_v11 = vld [vmem:[%s2084_s19 + $0x8] sm:$0xff]  ;;  %v385_v12 = vld [vmem:[%s2084_s19 + $0x18] sm:$0xff]  ;;  %v1599_v15 = vld [vmem:[#allocation5 + $0x70] sm:$0xff]   ;;  %s1771_s25 = scalar_lea.vmem %s2235_s17, 512  ;;  %s1883_s27 = smov [#allocation8]  }
  0x5d   : > { %v391_v13 = vpack.c.bf16 %v385_v12, %v383_v11  ;;  %v1598_v14 = vld [vmem:[#allocation5 + $0x28] sm:$0xff]   ;;  %v1600_v16 = vld [vmem:[#allocation5 + $0x30] sm:$0xff]   ;;  %v1601_v17 = vld [vmem:[#allocation5 + $0x78] sm:$0xff]   ;;  %p1772_p4 = scmp.ne.s32.totalorder %s2235_s17, %s1771_s25  ;;  %s1775_s14 = sshll.u32 %s1883_s27, 4  ;;  %s1776_s14 = int_to_ptr.vmem [resolvable:$false] %s1775_s14 }
  0x5e   : > { %1430 = vmatpush3.bf16.msra.mxu0 %v1590_v3  ;;  %v1602_v18 = vld [vmem:[#allocation5 + $0x38] sm:$0xff]   ;;  %v382_v19 = vld [vmem:[%s2084_s19] sm:$0xff]  ;;  %v384_v20 = vld [vmem:[%s2084_s19 + $0x10] sm:$0xff]  ;;  %p1778_p10 = scmp.lt.s32.totalorder %s2235_s17, %s1776_s14 }
  0x5f   : > { %1431 = vmatprep.subr.bf16.mxu0 %v1591_v4  ;;  %561 = vmatprep.mubr.bf16.mxu0 %v391_v13  ;;  %v387_v21 = vld [vmem:[%s2084_s19 + $0x28] sm:$0xff]  ;;  %v389_v22 = vld [vmem:[%s2084_s19 + $0x38] sm:$0xff]  ;;  %v390_v23 = vpack.c.bf16 %v384_v20, %v382_v19  ;;  %v386_v25 = vld [vmem:[%s2084_s19 + $0x20] sm:$0xff]  ;;  %p1773_p6 = pnand %p1772_p4, %p2030_p12 }
  0x60   : > { %v393_v24 = vpack.c.bf16 %v389_v22, %v387_v21  ;;  %v388_v26 = vld [vmem:[%s2084_s19 + $0x30] sm:$0xff]  ;;  %v1603_v28 = vld [vmem:[%s2326_s3] sm:$0xff]   ;;  %v1604_v29 = vld [vmem:[%s2326_s3 + $0x8] sm:$0xff]  }
  0x61   : > { %v392_v27 = vpack.c.bf16 %v388_v26, %v386_v25  ;;  %1475 = vmatprep.subr.bf16.mxu1 %v1603_v28  ;;  %v1605_v30 = vld [vmem:[%s2326_s3 + $0x10] sm:$0xff]   ;;  %v1606_v31 = vld [vmem:[%s2326_s3 + $0x18] sm:$0xff]   ;;  %v1607_v32 = vld [vmem:[%s2326_s3 + $0x20] sm:$0xff]   ;;  %p1774_p8 = pneg %p1773_p6 }
  0x62   : > { %1432 = vmatpush3.bf16.msra.mxu0 %v1592_v5  ;;  %1476 = vmatpush3.bf16.msra.mxu1 %v1603_v28  ;;  %v1608_v33 = vld [vmem:[%s2326_s3 + $0x28] sm:$0xff]   ;;  %v1609_v34 = vld [vmem:[%s2326_s3 + $0x30] sm:$0xff]   ;;  %v1610_v35 = vld [vmem:[%s2326_s3 + $0x38] sm:$0xff]  }
  0x63   : > { %1433 = vmatprep.subr.bf16.mxu0 %v1593_v6  ;;  %1477 = vmatprep.subr.bf16.mxu1 %v1604_v29  ;;  %v1368_v37 = vld [vmem:[%s2325_s2] ss:$0 sm:$0xff] }
  0x66   : > { %1434 = vmatpush3.bf16.msra.mxu0 %v1594_v7  ;;  %1478 = vmatpush3.bf16.msra.mxu1 %v1604_v29 }
  0x67   : > { %1435 = vmatprep.subr.bf16.mxu0 %v1595_v8  ;;  %1479 = vmatprep.subr.bf16.mxu1 %v1605_v30 }
  0x6a   : > { %1436 = vmatpush3.bf16.msra.mxu0 %v1596_v9  ;;  %1480 = vmatpush3.bf16.msra.mxu1 %v1605_v30 }
  0x6b   : > { %1437 = vmatprep.subr.bf16.mxu0 %v1597_v10  ;;  %1481 = vmatprep.subr.bf16.mxu1 %v1606_v31 }
  0x6e   : > { %1438 = vmatpush3.bf16.msra.mxu0 %v1598_v14  ;;  %1482 = vmatpush3.bf16.msra.mxu1 %v1606_v31 }
  0x6f   : > { %1439 = vmatprep.subr.bf16.mxu0 %v1599_v15  ;;  %1483 = vmatprep.subr.bf16.mxu1 %v1607_v32 }
  0x72   : > { %1440 = vmatpush3.bf16.msra.mxu0 %v1600_v16  ;;  %1484 = vmatpush3.bf16.msra.mxu1 %v1607_v32 }
  0x73   : > { %1441 = vmatprep.subr.bf16.mxu0 %v1601_v17  ;;  %1485 = vmatprep.subr.bf16.mxu1 %v1608_v33 }
  0x76   : > { %1442 = vmatpush3.bf16.msra.mxu0 %v1602_v18  ;;  %1486 = vmatpush3.bf16.msra.mxu1 %v1608_v33 }
  0x77   : > { %1487 = vmatprep.subr.bf16.mxu1 %v1609_v34 }
  0x79   : > { %562 = vmatmul.mubr.bf16.vlgmr.msra.gmra.mrb[0].mxu0 %v390_v23 }
  0x7a   : > { %569 = vmatprep.mubr.bf16.mxu0 %v393_v24  ;;  %1488 = vmatpush3.bf16.msra.mxu1 %v1609_v34 }
  0x7b   : > { %1489 = vmatprep.subr.bf16.mxu1 %v1610_v35 }
  0x7e   : > { %1490 = vmatpush3.bf16.msra.mxu1 %v1610_v35 }
  0x81   : > { %570 = vmatmul.mubr.bf16.gmra.mrb[4].mxu0 %v392_v27 }
 0x14c   : > { %v1443_v36 = vpop.f32.mrb[0].mxu0 }
 0x14d   : > { %v1444_v38 = vpop.f32.mrb[1].mxu0 }
 0x14e   : > { %v1445_v39 = vadd.f32 %v1444_v38, %v1443_v36  ;;  %v1446_v40 = vpop.f32.mrb[2].mxu0 }
 0x14f   : > { %v1447_v41 = vpop.f32.mrb[3].mxu0 }
 0x150   : > { %v564_v42 = vadd.f32 %v1445_v39, %v1368_v37  ;;  %v1448_v43 = vadd.f32 %v1447_v41, %v1446_v40 }
 0x152   : > { %v582_v44 = vand.u32 2147483647, %v564_v42  ;;  %v567_v45 = vadd.f32 %v1448_v43, %v1368_v37  ;;  %v578_v24 = vmax.f32 %v564_v42, 0.0 }
 0x154   : > { %v586_v46 = vsub.f32 0.0, %v582_v44  ;;  %v583_v47 = vand.u32 2147483647, %v567_v45  ;;  %v1449_v48 = vpop.f32.mrb[4].mxu0  ;;  %v579_v25 = vmax.f32 %v567_v45, 0.0 }
 0x155   : > { %v1450_v49 = vpop.f32.mrb[5].mxu0 }
 0x156   : > { %v590_v50 = vmul.f32 1.442695, %v586_v46  ;;  %v587_v51 = vsub.f32 0.0, %v583_v47  ;;  %v1451_v52 = vadd.f32 %v1450_v49, %v1449_v48  ;;  %v1452_v53 = vpop.f32.mrb[6].mxu0  ;;  %v1611_v47 = vld [vmem:[%s2328_s5] sm:$0xff]   ;;  %v1612_v48 = vld [vmem:[%s2328_s5 + $0x8] sm:$0xff]  }
 0x157   : > { %v1453_v54 = vpop.f32.mrb[7].mxu0  ;;  %1495 = vmatprep.subr.bf16.mxu0 %v1611_v47  ;;  %v1613_v49 = vld [vmem:[%s2328_s5 + $0x10] sm:$0xff]  }
 0x158   : > { %1625 = vpow2.f32 %v590_v50  ;;  %v592_v55 = vmul.f32 1.442695, %v587_v51  ;;  %v2129_v56 = vadd.f32 %v1451_v52, %v1368_v37  ;;  %v1454_v57 = vadd.f32 %v1453_v54, %v1452_v53  ;;  %1496 = vmatpush3.bf16.msra.mxu0 %v1611_v47  ;;  %v1614_v50 = vld [vmem:[%s2328_s5 + $0x18] sm:$0xff]   ;;  %v1615_v51 = vld [vmem:[%s2328_s5 + $0x20] sm:$0xff]   ;;  %v1616_v52 = vld [vmem:[%s2328_s5 + $0x28] sm:$0xff]  }
 0x159   : > { %1497 = vmatprep.subr.bf16.mxu0 %v1612_v48  ;;  %v1617_v53 = vld [vmem:[%s2328_s5 + $0x30] sm:$0xff]   ;;  %v1618_v54 = vld [vmem:[%s2328_s5 + $0x38] sm:$0xff]  }
 0x15a   : > { %1627 = vpow2.f32 %v592_v55  ;;  %v584_v58 = vand.u32 2147483647, %v2129_v56  ;;  %v575_v59 = vadd.f32 %v1454_v57, %v1368_v37  ;;  %v580_v41 = vmax.f32 %v2129_v56, 0.0  ;;  %v1385_v55 = vld [vmem:[%s2327_s4] ss:$0 sm:$0xff] }
 0x15c   : > { %v588_v60 = vsub.f32 0.0, %v584_v58  ;;  %v585_v61 = vand.u32 2147483647, %v575_v59  ;;  %v581_v42 = vmax.f32 %v575_v59, 0.0  ;;  %1498 = vmatpush3.bf16.msra.mxu0 %v1612_v48 }
 0x15d   : > { %1499 = vmatprep.subr.bf16.mxu0 %v1613_v49 }
 0x15e   : > { %v594_v62 = vmul.f32 1.442695, %v588_v60  ;;  %v589_v63 = vsub.f32 0.0, %v585_v61 }
 0x160   : > { %1629 = vpow2.f32 %v594_v62  ;;  %v596_v0 = vmul.f32 1.442695, %v589_v63  ;;  %1500 = vmatpush3.bf16.msra.mxu0 %v1613_v49 }
 0x161   : > { %1501 = vmatprep.subr.bf16.mxu0 %v1614_v50 }
 0x162   : > { %v1626_v1 = vpop.eup %1625  ;;  %1631 = vpow2.f32 %v596_v0 }
 0x163   : > { %v598_v2 = vadd.f32 1.0, %v1626_v1  ;;  %v601_v5 = vmul.f32 -0.5, %v1626_v1  ;;  %v604_v11 = vand.u32 2147483647, %v1626_v1 }
 0x164   : > { %v1628_v3 = vpop.eup %1627  ;;  %1502 = vmatpush3.bf16.msra.mxu0 %v1614_v50 }
 0x165   : > { %1633 = vlog2.f32 %v598_v2  ;;  %v607_v4 = vadd.f32 1.0, %v1628_v3  ;;  %v610_v7 = vmul.f32 -0.5, %v1628_v3  ;;  %v602_v10 = vadd.f32 1.0, %v601_v5  ;;  %1503 = vmatprep.subr.bf16.mxu0 %v1615_v51 }
 0x166   : > { %v613_v15 = vand.u32 2147483647, %v1628_v3  ;;  %vm605_vm0 = vcmp.lt.f32.partialorder %v604_v11, 0.0004427343 }
 0x167   : > { %1635 = vlog2.f32 %v607_v4  ;;  %v611_v13 = vadd.f32 1.0, %v610_v7  ;;  %v603_v17 = vmul.f32 %v1626_v1, %v602_v10 }
 0x168   : > { %vm614_vm1 = vcmp.lt.f32.partialorder %v613_v15, 0.0004427343  ;;  %1504 = vmatpush3.bf16.msra.mxu0 %v1615_v51 }
 0x169   : > { %v612_v22 = vmul.f32 %v1628_v3, %v611_v13  ;;  %1505 = vmatprep.subr.bf16.mxu0 %v1616_v52 }
 0x16a   : > { %v1630_v6 = vpop.eup %1629 }
 0x16b   : > { %v616_v8 = vadd.f32 1.0, %v1630_v6  ;;  %v619_v18 = vmul.f32 -0.5, %v1630_v6  ;;  %v622_v30 = vand.u32 2147483647, %v1630_v6 }
 0x16c   : > { %v1632_v9 = vpop.eup %1631  ;;  %1506 = vmatpush3.bf16.msra.mxu0 %v1616_v52 }
 0x16d   : > { %1637 = vlog2.f32 %v616_v8  ;;  %v625_v12 = vadd.f32 1.0, %v1632_v9  ;;  %v628_v23 = vmul.f32 -0.5, %v1632_v9  ;;  %v620_v27 = vadd.f32 1.0, %v619_v18  ;;  %1507 = vmatprep.subr.bf16.mxu0 %v1617_v53 }
 0x16e   : > { %v631_v34 = vand.u32 2147483647, %v1632_v9  ;;  %vm623_vm2 = vcmp.lt.f32.partialorder %v622_v30, 0.0004427343 }
 0x16f   : > { %v1634_v14 = vpop.eup %1633  ;;  %1639 = vlog2.f32 %v625_v12  ;;  %v629_v31 = vadd.f32 1.0, %v628_v23  ;;  %v621_v36 = vmul.f32 %v1630_v6, %v620_v27 }
 0x170   : > { %v600_v16 = vmul.f32 0.6931472, %v1634_v14  ;;  %vm632_vm3 = vcmp.lt.f32.partialorder %v631_v34, 0.0004427343  ;;  %1508 = vmatpush3.bf16.msra.mxu0 %v1617_v53 }
 0x171   : > { %v1636_v19 = vpop.eup %1635  ;;  %v630_v40 = vmul.f32 %v1632_v9, %v629_v31  ;;  %1509 = vmatprep.subr.bf16.mxu0 %v1618_v54 }
 0x172   : > { %v606_v20 = vsel %vm605_vm0, %v603_v17, %v600_v16  ;;  %v609_v21 = vmul.f32 0.6931472, %v1636_v19 }
 0x173   : > { %v634_v28 = vadd.f32 %v606_v20, %v578_v24 }
 0x174   : > { %v615_v26 = vsel %vm614_vm1, %v612_v22, %v609_v21  ;;  %1510 = vmatpush3.bf16.msra.mxu0 %v1618_v54 }
 0x175   : > { %v635_v29 = vadd.f32 %v615_v26, %v579_v25 }
 0x177   : > { %v1638_v32 = vpop.eup %1637  ;;  %v638_v33 = vpack.c.bf16 %v635_v29, %v634_v28 }
 0x178   : > { %v618_v35 = vmul.f32 0.6931472, %v1638_v32 }
 0x179   : > { %v1640_v37 = vpop.eup %1639  ;;  %1491 = vmatprep.mubr.bf16.mxu1 %v638_v33 }
 0x17a   : > { %v624_v38 = vsel %vm623_vm2, %v621_v36, %v618_v35  ;;  %v627_v39 = vmul.f32 0.6931472, %v1640_v37 }
 0x17b   : > { %v636_v44 = vadd.f32 %v624_v38, %v580_v41 }
 0x17c   : > { %v633_v43 = vsel %vm632_vm3, %v630_v40, %v627_v39 }
 0x17d   : > { %v637_v45 = vadd.f32 %v633_v43, %v581_v42 }
 0x17f   : > { %v639_v46 = vpack.c.bf16 %v637_v45, %v636_v44 }
 0x181   : > { %1492 = vmatmul.mubr.bf16.vlgmr.msra.gmra.mrb[0].mxu1 %v639_v46 }
 0x254   : > { %v1493_v56 = vpop.f32.mrb[0].mxu1 }
 0x255   : > { %v2160_v57 = vadd.f32 %v1493_v56, %v1385_v55  ;;  %v745_v58 = vpop.f32.mrb[1].mxu1 }
 0x256   : > { %v2162_v59 = vadd.f32 %v1385_v55, %v745_v58  ;;  %v1494_v60 = vpop.f32.mrb[2].mxu1 }
 0x257   : > { %v766_v61 = vand.u32 2147483647, %v2160_v57  ;;  %v2165_v62 = vadd.f32 %v1494_v60, %v1385_v55  ;;  %v748_v63 = vpop.f32.mrb[3].mxu1  ;;  %v762_v32 = vmax.f32 %v2160_v57, 0.0  ;;  %v1394_v60 = vld [vmem:[%s2329_s6] ss:$0 sm:$0xff] }
 0x258   : > { %v764_v0 = vand.u32 2147483647, %v2162_v59  ;;  %v2168_v1 = vadd.f32 %v1385_v55, %v748_v63  ;;  %v760_v45 = vmax.f32 %v2162_v59, 0.0  ;;  %v942_v59 = vlaneseq }
 0x259   : > { %v770_v2 = vsub.f32 0.0, %v766_v61  ;;  %v767_v3 = vand.u32 2147483647, %v2165_v62  ;;  %v763_v46 = vmax.f32 %v2165_v62, 0.0 }
 0x25a   : > { %v768_v4 = vsub.f32 0.0, %v764_v0  ;;  %v765_v5 = vand.u32 2147483647, %v2168_v1  ;;  %v761_v53 = vmax.f32 %v2168_v1, 0.0  ;;  %v943_v61 = vand.u32 127, %v942_v59 }
 0x25b   : > { %v776_v6 = vmul.f32 1.442695, %v770_v2  ;;  %v771_v7 = vsub.f32 0.0, %v767_v3 }
 0x25c   : > { %v772_v8 = vmul.f32 1.442695, %v768_v4  ;;  %v769_v9 = vsub.f32 0.0, %v765_v5  ;;  %vm944_vm8 = vcmp.ge.s32.totalorder %v943_v61, 32 }
 0x25d   : > { %1641 = vpow2.f32 %v776_v6  ;;  %v778_v10 = vmul.f32 1.442695, %v771_v7 }
 0x25e   : > { %1643 = vpow2.f32 %v772_v8  ;;  %v774_v11 = vmul.f32 1.442695, %v769_v9 }
 0x25f   : > { %1645 = vpow2.f32 %v778_v10 }
 0x260   : > { %1647 = vpow2.f32 %v774_v11 }
 0x267   : > { %v1642_v12 = vpop.eup %1641 }
 0x268   : > { %v1644_v13 = vpop.eup %1643  ;;  %v798_v14 = vadd.f32 1.0, %v1642_v12  ;;  %v801_v20 = vmul.f32 -0.5, %v1642_v12  ;;  %v804_v25 = vand.u32 2147483647, %v1642_v12 }
 0x269   : > { %v1646_v15 = vpop.eup %1645  ;;  %v780_v16 = vadd.f32 1.0, %v1644_v13  ;;  %v783_v21 = vmul.f32 -0.5, %v1644_v13  ;;  %v786_v29 = vand.u32 2147483647, %v1644_v13 }
 0x26a   : > { %v1648_v17 = vpop.eup %1647  ;;  %1649 = vlog2.f32 %v798_v14  ;;  %v807_v18 = vadd.f32 1.0, %v1646_v15  ;;  %v810_v22 = vmul.f32 -0.5, %v1646_v15  ;;  %v802_v23 = vadd.f32 1.0, %v801_v20 }
 0x26b   : > { %1651 = vlog2.f32 %v780_v16  ;;  %v789_v19 = vadd.f32 1.0, %v1648_v17  ;;  %v792_v24 = vmul.f32 -0.5, %v1648_v17  ;;  %v784_v26 = vadd.f32 1.0, %v783_v21 }
 0x26c   : > { %1653 = vlog2.f32 %v807_v18  ;;  %v811_v27 = vadd.f32 1.0, %v810_v22  ;;  %v813_v30 = vand.u32 2147483647, %v1646_v15  ;;  %v803_v34 = vmul.f32 %v1642_v12, %v802_v23 }
 0x26d   : > { %1655 = vlog2.f32 %v789_v19  ;;  %v793_v35 = vadd.f32 1.0, %v792_v24  ;;  %vm2173_vm4 = vcmp.lt.f32.partialorder %v804_v25, 0.0004427343  ;;  %v795_v39 = vand.u32 2147483647, %v1648_v17 }
 0x26e   : > { %v785_v41 = vmul.f32 %v1644_v13, %v784_v26  ;;  %v812_v43 = vmul.f32 %v1646_v15, %v811_v27  ;;  %vm787_vm5 = vcmp.lt.f32.partialorder %v786_v29, 0.0004427343  ;;  %vm814_vm6 = vcmp.lt.f32.partialorder %v813_v30, 0.0004427343 }
 0x26f   : > { %v794_v50 = vmul.f32 %v1648_v17, %v793_v35  ;;  %vm796_vm7 = vcmp.lt.f32.partialorder %v795_v39, 0.0004427343 }
 0x274   : > { %v1650_v28 = vpop.eup %1649 }
 0x275   : > { %v1652_v31 = vpop.eup %1651  ;;  %v800_v33 = vmul.f32 0.6931472, %v1650_v28 }
 0x276   : > { %v1654_v36 = vpop.eup %1653  ;;  %v782_v38 = vmul.f32 0.6931472, %v1652_v31 }
 0x277   : > { %v806_v40 = vsel %vm2173_vm4, %v803_v34, %v800_v33  ;;  %v809_v42 = vmul.f32 0.6931472, %v1654_v36  ;;  %v1656_v44 = vpop.eup %1655 }
 0x278   : > { %v788_v47 = vsel %vm787_vm5, %v785_v41, %v782_v38  ;;  %v791_v49 = vmul.f32 0.6931472, %v1656_v44  ;;  %v818_v51 = vadd.f32 %v806_v40, %v762_v32 }
 0x279   : > { %v815_v48 = vsel %vm814_vm6, %v812_v43, %v809_v42  ;;  %v816_v55 = vadd.f32 %v788_v47, %v760_v45 }
 0x27a   : > { %v819_v52 = vadd.f32 %v815_v48, %v763_v46  ;;  %v797_v54 = vsel %vm796_vm7, %v794_v50, %v791_v49 }
 0x27b   : > { %v817_v57 = vadd.f32 %v797_v54, %v761_v53 }
 0x27c   : > { %v821_v56 = vpack.c.bf16 %v819_v52, %v818_v51 }
 0x27d   : > { %v820_v58 = vpack.c.bf16 %v817_v57, %v816_v55 }
 0x27f   : > { %1511 = vmatprep.mubr.bf16.mxu0 %v820_v58 }
 0x280   : > { %1512 = vmatmul.mubr.bf16.vlgmr.msra.gmra.mrb[8].mxu0 %v821_v56 }
 0x353   : > { %v1513_v62 = vpop.f32.mrb[8].mxu0 }
 0x354   : > { %v936_v63 = vadd.f32 %v1513_v62, %v1394_v60  ;;  %v927_v0 = vpop.f32.mrb[9].mxu0 }
 0x355   : > { %v928_v1 = vadd.f32 %v1394_v60, %v927_v0  ;;  %v1514_v2 = vpop.f32.mrb[10].mxu0 }
 0x356   : > { %v1405_v3 = vclamps-f32 %v936_v63, 10.0  ;;  %v939_v4 = vadd.f32 %v1514_v2, %v1394_v60  ;;  %v930_v5 = vpop.f32.mrb[11].mxu0 }
 0x357   : > { %v1403_v6 = vclamps-f32 %v928_v1, 10.0  ;;  %v931_v7 = vadd.f32 %v1394_v60, %v930_v5 }
 0x358   : > { %v955_v8 = vsel %vm944_vm8, %v1405_v3, %v936_v63  ;;  %v1406_v9 = vclamps-f32 %v939_v4, 10.0 }
 0x359   : > { %960 = vst.msk [vmem:[%s2187_s22 + $0x10] sm:$0xff] %vm957_vm9, %v955_v8  ;;  %v953_v10 = vsel %vm944_vm8, %v1403_v6, %v928_v1  ;;  %v1404_v11 = vclamps-f32 %v931_v7, 10.0  ;;  %v966_v12 = vmul.f32 1.442695, %v955_v8  ;;  %v1621_v6 = vld [vmem:[%s2330_s7 + $0x4] ss:$8 sps:$4 sm:$0xff]  }
 0x35a   : > { %958 = vst.msk [vmem:[%s2187_s22] sm:$0xff] %vm957_vm9, %v953_v10  ;;  %v956_v13 = vsel %vm944_vm8, %v1406_v9, %v939_v4  ;;  %v962_v14 = vmul.f32 1.442695, %v953_v10  ;;  %1083 = vmatprep.subr.bf16.mxu1 %v1621_v6  ;;  %v1622_v9 = vld [vmem:[%s2330_s7 + $0x10] ss:$8 sps:$4 sm:$0xff]  }
 0x35b   : > { %961 = vst.msk [vmem:[%s2187_s22 + $0x18] sm:$0xff] %vm957_vm9, %v956_v13  ;;  %v954_v15 = vsel %vm944_vm8, %v1404_v11, %v931_v7  ;;  %1657 = vpow2.f32 %v966_v12  ;;  %v968_v16 = vmul.f32 1.442695, %v956_v13  ;;  %v1619_v7 = vld [vmem:[%s2330_s7] ss:$8 sps:$4 sm:$0xff]  }
 0x35c   : > { %959 = vst.msk [vmem:[%s2187_s22 + $0x8] sm:$0xff] %vm957_vm9, %v954_v15  ;;  %1659 = vpow2.f32 %v962_v14  ;;  %v964_v17 = vmul.f32 1.442695, %v954_v15  ;;  %1084 = vmatpush1.bf16.msra.mxu1 %v1619_v7  ;;  %s1777_s22 = scalar_lea.vmem %s1776_s14, 1024 }
 0x35d   : > { %1661 = vpow2.f32 %v968_v16  ;;  %p1779_p13 = scmp.lt.s32.totalorder %s1777_s22, %s1771_s25 }
 0x35e   : > { %1663 = vpow2.f32 %v964_v17 }
 0x35f   : > { %p1780_p3 = por %p1779_p13, %p1778_p10 }
 0x361   : > { %p1781_p7 = pnand %p1780_p3, %p1774_p8 }
 0x365   : > { %v1658_v18 = vpop.eup %1657 }
 0x366   : > { %v1660_v19 = vpop.eup %1659  ;;  %v972_v20 = vmul.f32 0.5, %v1658_v18 }
 0x367   : > { %v1662_v21 = vpop.eup %1661  ;;  %v970_v22 = vmul.f32 0.5, %v1660_v19 }
 0x368   : > { %v1664_v23 = vpop.eup %1663  ;;  %982 = vrot.lane.b32.xlu1 %v972_v20, %s1881_s23  ;;  %v973_v24 = vmul.f32 0.5, %v1662_v21 }
 0x369   : > { %978 = vrot.lane.b32.xlu0 %v970_v22, %s1881_s23  ;;  %v971_v25 = vmul.f32 0.5, %v1664_v23 }
 0x36c   : > { %984 = vrot.lane.b32.xlu1 %v973_v24, %s1881_s23 }
 0x36d   : > { %980 = vrot.lane.b32.xlu0 %v971_v25, %s1881_s23 }
 0x3da   : > { %v983_v26 = vpop.permute.xlu1 %982 }
 0x3db   : > { %v992_v27 = vadd.f32 %v983_v26, %v955_v8  ;;  %v979_v28 = vpop.permute.xlu0 %978  ;;  %v1624_v8 = vld [vmem:[%s2330_s7 + $0x14] ss:$8 sps:$4 sm:$0xff]  }
 0x3dc   : > { %v990_v29 = vadd.f32 %v979_v28, %v953_v10  ;;  %1085 = vmatprep.subr.bf16.mxu1 %v1624_v8  ;;  %v1882_v10 = vmov 0  }
 0x3dd   : > { %v996_v30 = vmin.f32 %v992_v27, 80.0  ;;  %1115 = vmatprep.mubr.bf16.mxu1 %v1882_v10  ;;  %1086 = vmatpush1.bf16.msra.mxu1 %v1622_v9 }
 0x3de   : > { %v994_v31 = vmin.f32 %v990_v29, 80.0  ;;  %v985_v32 = vpop.permute.xlu1 %984 }
 0x3df   : > { %v993_v33 = vadd.f32 %v985_v32, %v956_v13  ;;  %v981_v34 = vpop.permute.xlu0 %980  ;;  %v1002_v35 = vmul.f32 1.442695, %v996_v30 }
 0x3e0   : > { %v998_v36 = vmul.f32 1.442695, %v994_v31  ;;  %v991_v37 = vadd.f32 %v981_v34, %v954_v15 }
 0x3e1   : > { %v997_v38 = vmin.f32 %v993_v33, 80.0 }
 0x3e2   : > { %1665 = vpow2.f32 %v998_v36  ;;  %v995_v39 = vmin.f32 %v991_v37, 80.0 }
 0x3e3   : > { %1667 = vpow2.f32 %v1002_v35  ;;  %v1004_v40 = vmul.f32 1.442695, %v997_v38 }
 0x3e4   : > { %v1000_v41 = vmul.f32 1.442695, %v995_v39 }
 0x3e6   : > { %1669 = vpow2.f32 %v1000_v41 }
 0x3e7   : > { %1671 = vpow2.f32 %v1004_v40 }
 0x3ec   : > { %v1666_v42 = vpop.eup %1665 }
 0x3ed   : > { %v1007_v43 = vsel %vm1006_vm10, %v1666_v42, -inf  ;;  %v1668_v44 = vpop.eup %1667 }
 0x3ee   : > { %1008 = vmax.xlane.f32.xlu0 %v1007_v43  ;;  %v1013_v46 = vsel %vm1006_vm10, %v1668_v44, -inf }
 0x3f0   : > { %v1670_v45 = vpop.eup %1669 }
 0x3f1   : > { %v1010_v47 = vsel %vm1006_vm10, %v1670_v45, -inf  ;;  %v1672_v48 = vpop.eup %1671 }
 0x3f2   : > { %1014 = vmax.xlane.f32.xlu0 %v1013_v46  ;;  %1011 = vmax.xlane.f32.xlu1 %v1010_v47  ;;  %v1016_v49 = vsel %vm1006_vm10, %v1672_v48, -inf }
 0x3f6   : > { %1017 = vmax.xlane.f32.xlu0 %v1016_v49 }
 0x47b   : > { %v1009_v50 = vpop.xlane.xlu0 %1008 }
 0x47c   : > { %v1019_v51 = vsub.f32 %v1666_v42, %v1009_v50 }
 0x47e   : > { %v1023_v52 = vmul.f32 1.442695, %v1019_v51 }
 0x47f   : > { %v1012_v53 = vpop.xlane.xlu1 %1011  ;;  %v1015_v54 = vpop.xlane.xlu0 %1014 }
 0x480   : > { %1673 = vpow2.f32 %v1023_v52  ;;  %v1020_v55 = vsub.f32 %v1670_v45, %v1012_v53  ;;  %v1021_v56 = vsub.f32 %v1668_v44, %v1015_v54 }
 0x482   : > { %v1025_v57 = vmul.f32 1.442695, %v1020_v55  ;;  %v1027_v58 = vmul.f32 1.442695, %v1021_v56 }
 0x483   : > { %v1018_v59 = vpop.xlane.xlu0 %1017 }
 0x484   : > { %1675 = vpow2.f32 %v1025_v57  ;;  %v1022_v60 = vsub.f32 %v1672_v48, %v1018_v59 }
 0x485   : > { %1677 = vpow2.f32 %v1027_v58 }
 0x486   : > { %v1029_v61 = vmul.f32 1.442695, %v1022_v60 }
 0x488   : > { %1679 = vpow2.f32 %v1029_v61 }
 0x48a   : > { %v1674_v62 = vpop.eup %1673 }
 0x48b   : > { %v1031_v63 = vsel %vm1006_vm10, %v1674_v62, 0.0 }
 0x48c   : > { %1032 = vadd.xlane.f32.xlu1 %v1031_v63 }
 0x48e   : > { %v1676_v0 = vpop.eup %1675 }
 0x48f   : > { %v1678_v1 = vpop.eup %1677  ;;  %v1034_v2 = vsel %vm1006_vm10, %v1676_v0, 0.0 }
 0x490   : > { %1035 = vadd.xlane.f32.xlu0 %v1034_v2  ;;  %v1037_v3 = vsel %vm1006_vm10, %v1678_v1, 0.0 }
 0x491   : > { %1038 = vadd.xlane.f32.xlu1 %v1037_v3 }
 0x492   : > { %v1680_v4 = vpop.eup %1679 }
 0x493   : > { %v1040_v5 = vsel %vm1006_vm10, %v1680_v4, 0.0 }
 0x494   : > { %1041 = vadd.xlane.f32.xlu0 %v1040_v5 }
 0x519   : > { %v1033_v11 = vpop.xlane.xlu1 %1032 }
 0x51a   : > { %1681 = vrcp.f32 %v1033_v11 }
 0x51d   : > { %v1036_v12 = vpop.xlane.xlu0 %1035 }
 0x51e   : > { %1683 = vrcp.f32 %v1036_v12  ;;  %v1039_v13 = vpop.xlane.xlu1 %1038 }
 0x521   : > { %v1042_v14 = vpop.xlane.xlu0 %1041 }
 0x522   : > { %1685 = vrcp.f32 %v1042_v14 }
 0x523   : > { %1687 = vrcp.f32 %v1039_v13 }
 0x524   : > { %v1682_v15 = vpop.eup %1681 }
 0x525   : > { %v1047_v17 = vmul.f32 %v1682_v15, %v1674_v62 }
 0x528   : > { %v1684_v16 = vpop.eup %1683 }
 0x529   : > { %v1048_v18 = vmul.f32 %v1684_v16, %v1676_v0 }
 0x52b   : > { %v1051_v19 = vpack.c.bf16 %v1048_v18, %v1047_v17 }
 0x52c   : > { %v1686_v20 = vpop.eup %1685 }
 0x52d   : > { %1411 = vmatmul.mubr.msk.bf16.vlgmr.msra.gmra.mrb[4].mxu1 %vm1006_vm10, %v1051_v19  ;;  %v1688_v21 = vpop.eup %1687  ;;  %v1050_v22 = vmul.f32 %v1686_v20, %v1680_v4 }
 0x52e   : > { %1125 = vmatprep.mubr.bf16.mxu1 %v1882_v10  ;;  %v1049_v23 = vmul.f32 %v1688_v21, %v1678_v1 }
 0x530   : > { %v1052_v24 = vpack.c.bf16 %v1050_v22, %v1049_v23 }
 0x535   : > { %1412 = vmatmul.mubr.msk.bf16.gmra.mrb[8].mxu1 %vm1006_vm10, %v1052_v24 }
 0x600   : > { %v1117_v25 = vpop.f32.mrb[4].mxu1 }
 0x601   : > { %v1119_v26 = vpop.f32.mrb[5].mxu1 }
 0x602   : > { %v1121_v27 = vpop.f32.mrb[6].mxu1  ;;  %v1136_v28 = vmax.f32 %v1117_v25, %v1119_v26 }
 0x603   : > { %v1123_v29 = vpop.f32.mrb[7].mxu1 }
 0x604   : > { %1137 = vmax.xlane.f32.xlu1 %v1136_v28  ;;  %v1139_v30 = vmax.f32 %v1121_v27, %v1123_v29 }
 0x606   : > { %1140 = vmax.xlane.f32.xlu0 %v1139_v30 }
 0x608   : > { %v1127_v31 = vpop.f32.mrb[8].mxu1 }
 0x609   : > { %v1129_v32 = vpop.f32.mrb[9].mxu1 }
 0x60a   : > { %v1131_v33 = vpop.f32.mrb[10].mxu1  ;;  %v1142_v34 = vmax.f32 %v1127_v31, %v1129_v32 }
 0x60b   : > { %v1133_v35 = vpop.f32.mrb[11].mxu1 }
 0x60c   : > { %v1145_v36 = vmax.f32 %v1131_v33, %v1133_v35  ;;  %1143 = vmax.xlane.f32.xlu1 %v1142_v34 }
 0x60e   : > { %1146 = vmax.xlane.f32.xlu0 %v1145_v36 }
 0x691   : > { %v1138_v37 = vpop.xlane.xlu1 %1137 }
 0x692   : > { %v1148_v38 = vsub.f32 %v1117_v25, %v1138_v37  ;;  %v1149_v39 = vsub.f32 %v1119_v26, %v1138_v37 }
 0x693   : > { %v1141_v40 = vpop.xlane.xlu0 %1140 }
 0x694   : > { %v1156_v41 = vmul.f32 1.442695, %v1148_v38  ;;  %v1158_v42 = vmul.f32 1.442695, %v1149_v39  ;;  %v1150_v43 = vsub.f32 %v1121_v27, %v1141_v40  ;;  %v1151_v44 = vsub.f32 %v1123_v29, %v1141_v40 }
 0x696   : > { %1689 = vpow2.f32 %v1156_v41  ;;  %v1160_v45 = vmul.f32 1.442695, %v1150_v43  ;;  %v1162_v46 = vmul.f32 1.442695, %v1151_v44 }
 0x697   : > { %1691 = vpow2.f32 %v1158_v42 }
 0x698   : > { %1693 = vpow2.f32 %v1160_v45 }
 0x699   : > { %1695 = vpow2.f32 %v1162_v46  ;;  %v1144_v47 = vpop.xlane.xlu1 %1143 }
 0x69a   : > { %v1152_v48 = vsub.f32 %v1127_v31, %v1144_v47  ;;  %v1153_v49 = vsub.f32 %v1129_v32, %v1144_v47 }
 0x69b   : > { %v1147_v50 = vpop.xlane.xlu0 %1146 }
 0x69c   : > { %v1164_v51 = vmul.f32 1.442695, %v1152_v48  ;;  %v1166_v52 = vmul.f32 1.442695, %v1153_v49  ;;  %v1154_v53 = vsub.f32 %v1131_v33, %v1147_v50  ;;  %v1155_v54 = vsub.f32 %v1133_v35, %v1147_v50 }
 0x69e   : > { %1697 = vpow2.f32 %v1164_v51  ;;  %v1168_v55 = vmul.f32 1.442695, %v1154_v53  ;;  %v1170_v56 = vmul.f32 1.442695, %v1155_v54 }
 0x69f   : > { %1699 = vpow2.f32 %v1166_v52 }
 0x6a0   : > { %v1690_v57 = vpop.eup %1689  ;;  %1701 = vpow2.f32 %v1168_v55 }
 0x6a1   : > { %v1692_v58 = vpop.eup %1691  ;;  %1703 = vpow2.f32 %v1170_v56 }
 0x6a2   : > { %v1694_v59 = vpop.eup %1693  ;;  %v1172_v60 = vadd.f32 %v1692_v58, %v1690_v57 }
 0x6a3   : > { %v1696_v61 = vpop.eup %1695 }
 0x6a4   : > { %1173 = vadd.xlane.f32.xlu1 %v1172_v60  ;;  %v1175_v62 = vadd.f32 %v1696_v61, %v1694_v59 }
 0x6a6   : > { %1176 = vadd.xlane.f32.xlu0 %v1175_v62 }
 0x6a8   : > { %v2222_v63 = vpop.eup %1697 }
 0x6a9   : > { %v2224_v0 = vpop.eup %1699 }
 0x6aa   : > { %v2226_v1 = vpop.eup %1701  ;;  %v1178_v2 = vadd.f32 %v2224_v0, %v2222_v63 }
 0x6ab   : > { %v2230_v3 = vpop.eup %1703 }
 0x6ac   : > { %1179 = vadd.xlane.f32.xlu1 %v1178_v2  ;;  %v1181_v4 = vadd.f32 %v2230_v3, %v2226_v1 }
 0x6ae   : > { %1182 = vadd.xlane.f32.xlu0 %v1181_v4 }
 0x6af   : > { %1784 = shalt.err (!%p1781_p7)
}
 0x6b0   : > { %s1785_s19 = scalar_lea.hbm %s2241_s16, 512  ;;  %s1789_s23 = scalar_lea.hbm %s2332_s9, 1024 }
 0x6b1   : > { %p1786_p9 = scmp.ne.s32.totalorder %s2241_s16, %s1785_s19  ;;  %p1790_p5 = scmp.lt.u32.totalorder %s2241_s16, %s2332_s9 }
 0x6b2   : > { %p1791_p11 = scmp.lt.u32.totalorder %s1789_s23, %s1785_s19  ;;  %p1793_p4 = scmp.lt.u32.totalorder %s1785_s19, %s2241_s16 }
 0x6b3   : > { %p1787_p2 = pnand %p1786_p9, %p2030_p12 }
 0x6b4   : > { %p1792_p1 = por %p1791_p11, %p1790_p5 }
 0x6b5   : > { %p1788_p0 = pneg %p1787_p2 }
 0x6b6   : > { %p1794_p6 = por %p1793_p4, %p1792_p1 }
 0x6b8   : > { %p1795_p8 = pnand %p1794_p6, %p1788_p0 }
 0x6ba   : > { %1798 = shalt.err (!%p1795_p8)
}
 0x6bb   : > { %s1884_s25 = smov 128   ;;  %s1885_s14 = smov 8  }
 0x6bc   : > { %1522 = dma.vmem_to_hbm [thread:$0]  (%p2030_p12), %s2235_s17, 512, %s2241_s16, %s1210_s21, %s1884_s25, %s1884_s25, %s1885_s14  }
 0x6bd   : > { %s370_s22 = scalar_lea.vmem [#allocation7], %s1364_s20  ;;  %s1425_s17 = sshll.u32 %s1960_s13, 10 }
 0x6be   : > { %s1224_s16 = sshll.u32 %s370_s22, 4  ;;  %s2275_s20 = scalar_lea.hbm %s2331_s8, %s1425_s17  ;;  %s2277_s16 = int_to_ptr.vmem [resolvable:$true] %s1224_s16 }
 0x6bf   : > { %s1205_s13 = scalar_lea.sflag [#allocation4], %s2078_s18  ;;  %s1799_s15 = scalar_lea.vmem %s2277_s16, 1024 }
 0x6c0   : > { %p1800_p10 = scmp.ne.s32.totalorder %s2277_s16, %s1799_s15  ;;  %s1886_s26 = smov [#allocation7]  }
 0x6c1   : > { %s1803_s23 = sshll.u32 %s1886_s26, 4  ;;  %s1804_s23 = int_to_ptr.vmem [resolvable:$false] %s1803_s23 }
 0x6c2   : > { %p1801_p13 = pnand %p1800_p10, %p2030_p12  ;;  %s1805_s24 = scalar_lea.vmem %s1804_s23, 2048 }
 0x6c3   : > { %p1806_p7 = scmp.lt.s32.totalorder %s2277_s16, %s1804_s23  ;;  %p1807_p9 = scmp.lt.s32.totalorder %s1805_s24, %s1799_s15 }
 0x6c4   : > { %p1802_p3 = pneg %p1801_p13 }
 0x6c5   : > { %p1808_p2 = por %p1807_p9, %p1806_p7 }
 0x6c7   : > { %p1809_p0 = pnand %p1808_p2, %p1802_p3 }
 0x731   : > { %v1174_v5 = vpop.xlane.xlu1 %1173 }
 0x732   : > { %1705 = vrcp.f32 %v1174_v5 }
 0x733   : > { %v1177_v6 = vpop.xlane.xlu0 %1176 }
 0x734   : > { %1707 = vrcp.f32 %v1177_v6 }
 0x739   : > { %v1180_v7 = vpop.xlane.xlu1 %1179 }
 0x73a   : > { %1709 = vrcp.f32 %v1180_v7 }
 0x73b   : > { %v1183_v8 = vpop.xlane.xlu0 %1182 }
 0x73c   : > { %v1706_v9 = vpop.eup %1705  ;;  %1711 = vrcp.f32 %v1183_v8 }
 0x73d   : > { %v1185_v10 = vmul.f32 %v1706_v9, %v1690_v57  ;;  %v1186_v11 = vmul.f32 %v1706_v9, %v1692_v58 }
 0x73e   : > { %v1708_v12 = vpop.eup %1707 }
 0x73f   : > { %1196 = vst [vmem:[%s370_s22] sm:$0xff] %v1185_v10  ;;  %1197 = vst [vmem:[%s370_s22 + $0x8] sm:$0xff] %v1186_v11  ;;  %v1188_v13 = vmul.f32 %v1708_v12, %v1694_v59  ;;  %v1189_v14 = vmul.f32 %v1708_v12, %v1696_v61 }
 0x741   : > { %1198 = vst [vmem:[%s370_s22 + $0x10] sm:$0xff] %v1188_v13  ;;  %1199 = vst [vmem:[%s370_s22 + $0x18] sm:$0xff] %v1189_v14 }
 0x744   : > { %v1710_v15 = vpop.eup %1709 }
 0x745   : > { %v1191_v16 = vmul.f32 %v1710_v15, %v2222_v63  ;;  %v1192_v17 = vmul.f32 %v1710_v15, %v2224_v0 }
 0x746   : > { %v1712_v18 = vpop.eup %1711 }
 0x747   : > { %1200 = vst [vmem:[%s370_s22 + $0x20] sm:$0xff] %v1191_v16  ;;  %1201 = vst [vmem:[%s370_s22 + $0x28] sm:$0xff] %v1192_v17  ;;  %v1194_v19 = vmul.f32 %v1712_v18, %v2226_v1  ;;  %v1195_v20 = vmul.f32 %v1712_v18, %v2230_v3 }
 0x749   : > { %1202 = vst [vmem:[%s370_s22 + $0x30] sm:$0xff] %v1194_v19  ;;  %1203 = vst [vmem:[%s370_s22 + $0x38] sm:$0xff] %v1195_v20 }
 0x74a   : > { %1812 = shalt.err (!%p1809_p0)
}
 0x74b   : > { %s1813_s27 = scalar_lea.hbm %s2275_s20, 1024  ;;  %s1817_s22 = scalar_lea.hbm %s2331_s8, 2048 }
 0x74c   : > { %p1814_p5 = scmp.ne.s32.totalorder %s2275_s20, %s1813_s27  ;;  %p1818_p4 = scmp.lt.u32.totalorder %s2275_s20, %s2331_s8 }
 0x74d   : > { %p1819_p6 = scmp.lt.u32.totalorder %s1817_s22, %s1813_s27  ;;  %p1821_p10 = scmp.lt.u32.totalorder %s1813_s27, %s2275_s20 }
 0x74e   : > { %p1815_p11 = pnand %p1814_p5, %p2030_p12 }
 0x74f   : > { %p1820_p8 = por %p1819_p6, %p1818_p4 }
 0x750   : > { %p1816_p1 = pneg %p1815_p11 }
 0x751   : > { %p1822_p13 = por %p1821_p10, %p1820_p8 }
 0x753   : > { %p1823_p3 = pnand %p1822_p13, %p1816_p1 }
 0x755   : > { %1826 = shalt.err (!%p1823_p3)
}
 0x756   : > { %s1887_s19 = smov 256   ;;  %s1888_s15 = smov 16  }
 0x757   : > { %1521 = dma.vmem_to_hbm [thread:$0]  (%p2030_p12), %s2277_s16, 1024, %s2275_s20, %s1205_s13, %s1887_s19, %s1887_s19, %s1888_s15  }
 0x758 PF: > { %s2354_s26 = sld [smem:[#allocation14_spill]]  ;;  %s1255_s23 = sand.u32 1, %s1861_s30  }
 0x759   : > { %p2356_p9 = scmp.ge.s32.totalorder %s1873_s12, 2  ;;  %s1256_s24 = scalar_lea.sflag [#allocation4], %s1255_s23 }
 0x75e   : > { %p2355_p7 = scmp.ne.s32.totalorder %s2354_s26, 0 }
 0x760   : > { %p1534_p2 = pnand %p2356_p9, %p2355_p7 }
 0x762   : > { %1852 = dma.done.wait (!%p1534_p2), %s1256_s24, 1024  }
 0x763   : > { %1854 = vsyncadd (!%p1534_p2), %s1256_s24, 4294966272  ;;  %s1265_s27 = scalar_lea.sflag [#allocation9], %s1255_s23 }
 0x764   : > { %1856 = dma.done.wait (!%p1534_p2), %s1265_s27, 512  }
 0x765   : > { %1858 = vsyncadd (!%p1534_p2), %s1265_s27, 4294966784  ;;  %s2357_s12 = sld [smem:[#allocation15_spill]]  ;;  %s2358_s30 = smov %s1865_s10 }
 0x766   : > { %s2359_s10 = smov %s1869_s11  ;;  %s2360_s11 = smov %s2026_s28 }
 0x76b   : > { %p27_p12 = scmp.ge.s32.totalorder %s2357_s12, 4  }
 0x76d   :  { %29 = sbr.rel (!%p27_p12) target bundleno = 8 (0x8), region = 118 }
 0x774   :  { %1270 = vsyncpa [#allocation3], 1 }
 0x775   :  { %1272 = vsyncpa [#allocation3 + $0x1], 1 }
 0x776   :  { %1273 = vsyncpa [#allocation6], 1 }
 0x777   :  { %1274 = vsyncpa [#allocation4], 1 }
 0x778   :  { %1276 = vsyncpa [#allocation4 + $0x1], 1 }
 0x779   :  { %1277 = vsyncpa [#allocation9], 1 }
 0x77a   :  { %1279 = vsyncpa [#allocation9 + $0x1], 1 }

</bundles_post_ra>
